<compile_context>
chip_gen: v7x
topology: tpu7x:2x2x1
jax: 0.10.0
libtpu: 0.0.40
codegen_flags: <defaults>
</compile_context>

<pallas_src>
import functools

import jax
import jax.numpy as jnp
from jax.experimental import pallas as pl
from jax.experimental.pallas import tpu as pltpu


def _round_up(x, m):
    return ((x + m - 1) // m) * m


def _label_smoothing_kernel(pred_ref, target_ref, out_ref, *, n_rows,
                            tile_n, num_classes, smoothing):
    """Per-tile partial sum of sum_c(-true_dist[n,c] * log_softmax(pred)[n,c]).

    Uses the algebraic form
        loss_row = -[(confidence - off) * logp[target] + off * sum_c logp]
    so the smoothed one-hot distribution is never materialized (saves a full
    (tile_n, C) select + multiply pass).
    """
    confidence = 1.0 - smoothing
    off_value = smoothing / (num_classes - 1)

    i = pl.program_id(0)

    x = pred_ref[...].astype(jnp.float32)                        # (tile_n, C)
    tgt = target_ref[...]                                         # (tile_n, 1) i32

    # Mask rows past the true batch size (last, partial tile / padded block).
    row_ids = i * tile_n + jax.lax.broadcasted_iota(jnp.int32, (tile_n, 1), 0)
    valid = row_ids < n_rows                                      # (tile_n, 1)
    x = jnp.where(valid, x, 0.0)  # keep padded rows finite (no inf/nan)

    # Numerically-stable log-softmax pieces (logp = z - lse).
    m = jnp.max(x, axis=-1, keepdims=True)
    z = x - m
    lse = jnp.log(jnp.sum(jnp.exp(z), axis=-1, keepdims=True))    # (tile_n, 1)

    # sum_c logp and logp at the target class (single masked select-reduce).
    sum_logp = jnp.sum(z, axis=-1, keepdims=True) - num_classes * lse
    cls_ids = jax.lax.broadcasted_iota(jnp.int32, x.shape, 1)     # (tile_n, C)
    z_at_tgt = jnp.sum(jnp.where(cls_ids == tgt, z, 0.0), axis=-1, keepdims=True)
    logp_tgt = z_at_tgt - lse

    per_row = -((confidence - off_value) * logp_tgt + off_value * sum_logp)
    per_row = jnp.where(valid, per_row, 0.0)

    # Lane-dense (unmasked) store of the tile's partial sum.
    tile_sum = jnp.sum(per_row)
    out_ref[...] = jnp.full(out_ref.shape, tile_sum, dtype=out_ref.dtype)


def label_smoothing_loss(pred, target, *, num_classes=5, smoothing=0.0):
    """Pallas TPU implementation of LabelSmoothingLoss.forward.

    pred:   (N, C) float logits (any float dtype; cast to f32 in-kernel)
    target: (N,)  integer labels in [0, C)
    returns scalar float32 loss
    """
    n, c = pred.shape
    assert c == num_classes
    assert num_classes >= 2, "smoothing/(classes-1) requires >= 2 classes"

    target2d = target.astype(jnp.int32).reshape(n, 1)

    # Tile over the batch dim. Keep double-buffered tiles well under VMEM on
    # all generations (conservative ~8 MiB budget covers v7x's 64 MiB/TC too).
    bytes_per_row = c * 4
    max_rows = max(8, (8 * 1024 * 1024) // (2 * bytes_per_row))
    tile_n = min(_round_up(n, 8), 512, (max_rows // 8) * 8)
    tile_n = max(tile_n, 8)
    num_tiles = pl.cdiv(n, tile_n)

    kernel = functools.partial(_label_smoothing_kernel,
                               n_rows=n,
                               tile_n=tile_n,
                               num_classes=num_classes,
                               smoothing=smoothing)

    # NOTE: for tiny C (e.g. 5) lane utilization inside vregs is low, but the
    # kernel is HBM-bound and each (tile_n, C) block is a single contiguous
    # DMA, so a wrapper-side transpose would only add HBM traffic.
    # TODO(synk): for vocab-scale C, add a second ("arbitrary") grid axis over
    # C with an online-LSE accumulator instead of one row-tile per step.
    partials = pl.pallas_call(
        kernel,
        out_shape=jax.ShapeDtypeStruct((num_tiles, 1, 128), jnp.float32),
        grid=(num_tiles,),
        in_specs=[
            pl.BlockSpec((tile_n, c), lambda i: (i, 0)),   # logits tile
            pl.BlockSpec((tile_n, 1), lambda i: (i, 0)),   # labels tile
        ],
        out_specs=pl.BlockSpec((1, 1, 128), lambda i: (i, 0, 0)),
        compiler_params=pltpu.CompilerParams(
            dimension_semantics=("parallel",)),
    )(pred, target2d)

    # Finish the mean in the wrapper (per-tile partial sums -> scalar).
    return jnp.sum(partials[:, 0, 0]) / jnp.float32(n)


def _reference(pred, target, num_classes, smoothing):
    confidence = 1.0 - smoothing
    logp = jax.nn.log_softmax(pred.astype(jnp.float32), axis=-1)
    true_dist = jnp.full_like(logp, smoothing / (num_classes - 1))
    onehot = jax.nn.one_hot(target, num_classes, dtype=logp.dtype)
    true_dist = jnp.where(onehot > 0, confidence, true_dist)
    return jnp.mean(jnp.sum(-true_dist * logp, axis=-1))


if __name__ == "__main__":
    num_classes = 5
    smoothing = 0.1

    key = jax.random.PRNGKey(0)

    # Case 1: original small shape, f32.
    k1, k2, key = jax.random.split(key, 3)
    pred = jax.random.normal(k1, (8, num_classes), dtype=jnp.float32)
    target = jax.random.randint(k2, (8,), 0, num_classes, dtype=jnp.int32)
    loss = jax.block_until_ready(
        label_smoothing_loss(pred, target,
                             num_classes=num_classes, smoothing=smoothing))
    ref = _reference(pred, target, num_classes, smoothing)
    assert jnp.allclose(loss, ref, atol=1e-5, rtol=1e-5), (loss, ref)

    # Case 2: multiple tiles + partial last tile (exercises masking), f32.
    k1, k2, key = jax.random.split(key, 3)
    pred = jax.random.normal(k1, (1030, num_classes), dtype=jnp.float32)
    target = jax.random.randint(k2, (1030,), 0, num_classes, dtype=jnp.int32)
    loss = jax.block_until_ready(
        label_smoothing_loss(pred, target,
                             num_classes=num_classes, smoothing=smoothing))
    ref = _reference(pred, target, num_classes, smoothing)
    assert jnp.allclose(loss, ref, atol=1e-5, rtol=1e-5), (loss, ref)

    # Case 3: bf16 logits go straight into the kernel (no wrapper-side cast).
    k1, k2, key = jax.random.split(key, 3)
    pred = jax.random.normal(k1, (16, num_classes), dtype=jnp.bfloat16)
    target = jax.random.randint(k2, (16,), 0, num_classes, dtype=jnp.int32)
    loss = jax.block_until_ready(
        label_smoothing_loss(pred, target,
                             num_classes=num_classes, smoothing=smoothing))
    ref = _reference(pred, target, num_classes, smoothing)
    assert jnp.allclose(loss, ref, atol=1e-4, rtol=1e-4), (loss, ref)

    print("KERNEL_OK")
</pallas_src>

<mosaic_0001>
module attributes {stable_mosaic.version = 11 : i64} {
  func.func @_label_smoothing_kernel(%arg0: i32, %arg1: memref<8x5xf32, #tpu.memory_space<vmem>>, %arg2: memref<8x1xi32, #tpu.memory_space<vmem>>, %arg3: memref<1x1x128xf32, #tpu.memory_space<vmem>>) attributes {dimension_semantics = [#tpu.dimension_semantics<parallel>], iteration_bounds = array<i64: 1>, scalar_prefetch = 0 : i64, scratch_operands = 0 : i64, tpu.core_type = #tpu.core_type<tc>, window_params = [{transform_indices = @transform_0, window_bounds = array<i64: 8, 5>}, {transform_indices = @transform_1, window_bounds = array<i64: 8, 1>}, {transform_indices = @transform_2, window_bounds = array<i64: 1, 1, 128>}]} {
    %c0 = arith.constant 0 : index
    %c0_0 = arith.constant 0 : index
    %0 = vector.load %arg1[%c0, %c0_0] : memref<8x5xf32, #tpu.memory_space<vmem>>, vector<8x5xf32>
    %c0_1 = arith.constant 0 : index
    %c0_2 = arith.constant 0 : index
    %1 = vector.load %arg2[%c0_1, %c0_2] : memref<8x1xi32, #tpu.memory_space<vmem>>, vector<8x1xi32>
    %c8_i32 = arith.constant 8 : i32
    %2 = arith.muli %arg0, %c8_i32 : i32
    %3 = tpu.iota {dimensions = array<i32: 0>} : vector<8x1xi32>
    %4 = vector.broadcast %2 : i32 to vector<8x1xi32>
    %5 = arith.addi %4, %3 : vector<8x1xi32>
    %c8_i32_3 = arith.constant 8 : i32
    %6 = vector.broadcast %c8_i32_3 : i32 to vector<8x1xi32>
    %7 = arith.cmpi slt, %5, %6 : vector<8x1xi32>
    %cst = arith.constant 0.000000e+00 : f32
    %8 = vector.shape_cast %7 : vector<8x1xi1> to vector<8x1xi1>
    %9 = vector.broadcast %8 : vector<8x1xi1> to vector<8x5xi1>
    %10 = vector.broadcast %cst : f32 to vector<8x5xf32>
    %11 = arith.select %9, %0, %10 : vector<8x5xi1>, vector<8x5xf32>
    %cst_4 = arith.constant dense<0xFF800000> : vector<8xf32>
    %12 = vector.multi_reduction <maximumf>, %11, %cst_4 [1] : vector<8x5xf32> to vector<8xf32>
    %13 = vector.shape_cast %12 : vector<8xf32> to vector<8x1xf32>
    %14 = vector.broadcast %13 : vector<8x1xf32> to vector<8x5xf32>
    %15 = arith.subf %11, %14 : vector<8x5xf32>
    %16 = math.exp %15 : vector<8x5xf32>
    %cst_5 = arith.constant dense<0.000000e+00> : vector<8xf32>
    %17 = vector.multi_reduction <add>, %16, %cst_5 [1] : vector<8x5xf32> to vector<8xf32>
    %18 = vector.shape_cast %17 : vector<8xf32> to vector<8x1xf32>
    %19 = math.log %18 : vector<8x1xf32>
    %cst_6 = arith.constant dense<0.000000e+00> : vector<8xf32>
    %20 = vector.multi_reduction <add>, %15, %cst_6 [1] : vector<8x5xf32> to vector<8xf32>
    %21 = vector.shape_cast %20 : vector<8xf32> to vector<8x1xf32>
    %cst_7 = arith.constant 5.000000e+00 : f32
    %22 = vector.broadcast %cst_7 : f32 to vector<8x1xf32>
    %23 = arith.mulf %22, %19 : vector<8x1xf32>
    %24 = arith.subf %21, %23 : vector<8x1xf32>
    %25 = tpu.iota {dimensions = array<i32: 1>} : vector<8x5xi32>
    %26 = vector.broadcast %1 : vector<8x1xi32> to vector<8x5xi32>
    %27 = arith.cmpi eq, %25, %26 : vector<8x5xi32>
    %cst_8 = arith.constant 0.000000e+00 : f32
    %28 = vector.broadcast %cst_8 : f32 to vector<8x5xf32>
    %29 = arith.select %27, %15, %28 : vector<8x5xi1>, vector<8x5xf32>
    %cst_9 = arith.constant dense<0.000000e+00> : vector<8xf32>
    %30 = vector.multi_reduction <add>, %29, %cst_9 [1] : vector<8x5xf32> to vector<8xf32>
    %31 = vector.shape_cast %30 : vector<8xf32> to vector<8x1xf32>
    %32 = arith.subf %31, %19 : vector<8x1xf32>
    %cst_10 = arith.constant 8.750000e-01 : f32
    %33 = vector.broadcast %cst_10 : f32 to vector<8x1xf32>
    %34 = arith.mulf %33, %32 : vector<8x1xf32>
    %cst_11 = arith.constant 2.500000e-02 : f32
    %35 = vector.broadcast %cst_11 : f32 to vector<8x1xf32>
    %36 = arith.mulf %35, %24 : vector<8x1xf32>
    %37 = arith.addf %34, %36 : vector<8x1xf32>
    %cst_12 = arith.constant 0.000000e+00 : f32
    %38 = vector.broadcast %cst_12 : f32 to vector<8x1xf32>
    %39 = arith.subf %38, %37 : vector<8x1xf32>
    %cst_13 = arith.constant 0.000000e+00 : f32
    %40 = vector.broadcast %cst_13 : f32 to vector<8x1xf32>
    %41 = arith.select %7, %39, %40 : vector<8x1xi1>, vector<8x1xf32>
    %42 = vector.shape_cast %41 : vector<8x1xf32> to vector<1x8x1xf32>
    %cst_14 = arith.constant dense<0.000000e+00> : vector<1xf32>
    %43 = vector.multi_reduction <add>, %42, %cst_14 [1, 2] : vector<1x8x1xf32> to vector<1xf32>
    %44 = vector.shape_cast %43 : vector<1xf32> to vector<1x1x1xf32>
    %45 = vector.extract %44[0, 0, 0] : f32 from vector<1x1x1xf32>
    %46 = vector.broadcast %45 : f32 to vector<1x1x128xf32>
    %c0_15 = arith.constant 0 : index
    %c0_16 = arith.constant 0 : index
    %c0_17 = arith.constant 0 : index
    %47 = vector.load %arg3[%c0_15, %c0_16, %c0_17] : memref<1x1x128xf32, #tpu.memory_space<vmem>>, vector<1x1x128xf32>
    tpu.vector_store %arg3[%c0_15, %c0_16, %c0_17], %46 {strides = array<i32>} : memref<1x1x128xf32, #tpu.memory_space<vmem>>, vector<1x1x128xf32>,
    return
  }
  func.func @transform_0(%arg0: i32) -> (i32, i32) {
    %c0_i32 = arith.constant 0 : i32
    %c0_i32_0 = arith.constant 0 : i32
    return %arg0, %c0_i32 : i32, i32
  }
  func.func @transform_1(%arg0: i32) -> (i32, i32) {
    %c0_i32 = arith.constant 0 : i32
    %c0_i32_0 = arith.constant 0 : i32
    return %arg0, %c0_i32 : i32, i32
  }
  func.func @transform_2(%arg0: i32) -> (i32, i32, i32) {
    %c0_i32 = arith.constant 0 : i32
    %c0_i32_0 = arith.constant 0 : i32
    %c0_i32_1 = arith.constant 0 : i32
    return %arg0, %c0_i32, %c0_i32_0 : i32, i32, i32
  }
}

</mosaic_0001>

<bundles_post_ra>
// kernel: tpu_custom_call.1
= control target key start
LH: loop header
LB: loop body
LE: loop exit
PB: predicated region body
PF: predicated region fallthrough
CT: control target
= control target key end

     0   :  { %vm23_vm0 = vcmask 39936   ;;  %s155_s0 = inlined_call_operand.vmem [shape: f32[8,5], index: 0, kind: input, shape index: {}]   ;;  %s156_s1 = inlined_call_operand.vmem [shape: s32[8,1], index: 1, kind: input, shape index: {}]   ;;  %s157_s2 = inlined_call_operand.hbm [shape: f32[1,1,128], index: 2, kind: output, shape index: {}]  }
   0x1   :  { %v12_v0 = vld [vmem:[%s155_s0] sm:$0xff] }
   0x2   :  { %7 = vsyncpa [#allocation3], 0  ;;  %v24_v1 = vsel %vm23_vm0, %v12_v0, -inf  ;;  %v116_v2 = vmov 0   ;;  %v13_v3 = vld [vmem:[%s156_s1] sm:$0xff]  ;;  %v40_v7 = vlaneseq  ;;  %vm56_vm2 = vcmask 7168  }
   0x3   :  { %87 = vset.pattern.permute.xlu0 %v116_v2  ;;  %s117_s0 = smov [#allocation2]  }
   0x4   :  { %25 = vmax.xlane.f32.xlu0 %v24_v1  ;;  %v41_v8 = vand.u32 127, %v40_v7  ;;  %s75_s1 = sshll.u32 %s117_s0, 4  ;;  %s76_s1 = int_to_ptr.vmem [resolvable:$true] %s75_s1 }
   0x5   :  { %s92_s14 = scalar_lea.vmem %s76_s1, 16  ;;  %s96_s15 = scalar_lea.vmem %s76_s1, 32 }
   0x6   :  { %p93_p0 = scmp.ne.s32.totalorder %s76_s1, %s92_s14  ;;  %p97_p1 = scmp.lt.s32.totalorder %s76_s1, %s76_s1 }
   0x7   :  { %p98_p2 = scmp.lt.s32.totalorder %s96_s15, %s92_s14 }
   0x9   :  { %p99_p3 = por %p98_p2, %p97_p1 }
   0xb   :  { %p100_p4 = pnand %p99_p3, %p93_p0 }
  0x1a   :  { %43 = vperm.xlu0 %87, %v13_v3  }
  0x91   :  { %v26_v4 = vpop.xlane.xlu0 %25 }
  0x92   :  { %v27_v5 = vsub.f32 %v12_v0, %v26_v4 }
  0x94   :  { %v28_v6 = vmul.f32 1.442695, %v27_v5  ;;  %v35_v12 = vsel %vm23_vm0, %v27_v5, 0.0 }
  0x96   :  { %88 = vpow2.f32 %v28_v6 }
  0x99   :  { %v44_v10 = vpop.permute.xlu0 %43 }
  0x9a   :  { %vm45_vm1 = vcmp.eq.s32.totalorder %v41_v8, %v44_v10 }
  0x9b   :  { %v46_v13 = vsel %vm45_vm1, %v27_v5, 0.0 }
  0x9c   :  { %v47_v14 = vsel %vm23_vm0, %v46_v13, 0.0 }
  0xa0   :  { %v89_v9 = vpop.eup %88 }
  0xa1   :  { %v30_v11 = vsel %vm23_vm0, %v89_v9, 0.0 }
  0xa2   :  { %31 = vadd.xlane.f32.xlu1 %v30_v11 }
  0xa6   :  { %36 = vadd.xlane.f32.xlu1 %v35_v12 }
  0xaa   :  { %48 = vadd.xlane.f32.xlu1 %v47_v14 }
 0x12f   :  { %v32_v15 = vpop.xlane.xlu1 %31 }
 0x130   :  { %90 = vlog2.f32 %v32_v15 }
 0x133   :  { %v37_v16 = vpop.xlane.xlu1 %36 }
 0x137   :  { %v49_v19 = vpop.xlane.xlu1 %48 }
 0x13a   :  { %v91_v17 = vpop.eup %90 }
 0x13b   :  { %v34_v18 = vmul.f32 0.6931472, %v91_v17 }
 0x13d   :  { %v38_v20 = vmul.f32 5.0, %v34_v18  ;;  %v50_v21 = vsub.f32 %v49_v19, %v34_v18 }
 0x13f   :  { %v39_v22 = vsub.f32 %v37_v16, %v38_v20  ;;  %v51_v24 = vmul.f32 0.875, %v50_v21 }
 0x141   :  { %v52_v23 = vmul.f32 0.025, %v39_v22 }
 0x143   :  { %v53_v25 = vadd.f32 %v52_v23, %v51_v24 }
 0x145   :  { %v54_v26 = vsub.f32 0.0, %v53_v25 }
 0x147   :  { %v57_v27 = vsel %vm56_vm2, %v54_v26, 0.0 }
 0x148   :  { %58 = vadd.xlane.f32.xlu1 %v57_v27 }
 0x1d5   :  { %v59_v28 = vpop.xlane.xlu1 %58 }
 0x1d6   :  { %v60_v29 = vrot.slane %v59_v28, 4 }
 0x1d8   :  { %v61_v30 = vadd.f32 %v60_v29, %v59_v28 }
 0x1da   :  { %v62_v31 = vrot.slane %v61_v30, 2 }
 0x1dc   :  { %v63_v32 = vadd.f32 %v62_v31, %v61_v30 }
 0x1de   :  { %v64_v33 = vrot.slane %v63_v32, 1 }
 0x1e0   :  { %v65_v34 = vadd.f32 %v64_v33, %v63_v32 }
 0x1e2   :  { %83 = vpush %v65_v34 }
 0x213   :  { %s84_s13 = spop %83 }
 0x214   :  { %v67_v35 = vstv %s84_s13 }
 0x215   :  { %68 = vst [vmem:[#allocation2] sm:$0x1] %v67_v35 }
 0x216   :  { %103 = shalt.err (!%p100_p4)
}
 0x217   :  { %s104_s18 = scalar_lea.hbm %s157_s2, 16 }
 0x218   :  { %p105_p5 = scmp.ne.s32.totalorder %s157_s2, %s104_s18  ;;  %p108_p6 = scmp.lt.u32.totalorder %s104_s18, %s157_s2 }
 0x21a   :  { %p110_p7 = pnand %p108_p6, %p105_p5 }
 0x21c   :  { %113 = shalt.err (!%p110_p7)
}
 0x21d   :  { %78 = dma.vmem_to_hbm [thread:$0]  %s76_s1, 16, %s157_s2, [#allocation3]  }
 0x21e   :  { %114 = dma.done.wait [#allocation3], 16  }
 0x21f   :  { %115 = vsyncadd [#allocation3], 4294967280 }
 0x220   :  { %82 = vsyncpa [#allocation3], 1 }

</bundles_post_ra>
